<compile_context>
chip_gen: v5e
topology: v5e:2x2
jax: 0.10.0
libtpu: 0.0.40
codegen_flags: <defaults>
</compile_context>

<pallas_src>
import functools
import math

import jax
import jax.numpy as jnp
from jax import lax
from jax.experimental import pallas as pl
from jax.experimental.pallas import tpu as pltpu


# ----------------------------------------------------------------------------
# Fused AttentionEncoder kernel
# ----------------------------------------------------------------------------

def _attn_encoder_kernel(x_ref, w_ref, p_ref, o_ref, *, eps, input_size,
                         key_tile):
    # grid = (batch_blocks, num_layers).  The layer axis MUST remain the
    # innermost ("arbitrary") grid axis: the output block keeps the same block
    # index across layers and carries the residual stream in VMEM.
    layer = pl.program_id(1)

    @pl.when(layer == 0)
    def _():
        o_ref[...] = x_ref[...]

    D = input_size
    x = o_ref[...]                                   # (Bt, S, D) float32
    Bt, S, _ = x.shape
    x_bf = x.astype(jnp.bfloat16)

    # packed per-layer params: rows = [bk, gate0, gate1, gate2, gamma, beta]
    prm = p_ref[layer]                               # (6, D) float32
    bk = prm[0:1, :]
    g0 = prm[1:2, :]
    g1 = prm[2:3, :]
    g2 = prm[3:4, :]
    gamma = prm[4:5, :]
    beta = prm[5:6, :]

    # shared causal mask bias (built once, reused by all three softmaxes)
    row = lax.broadcasted_iota(jnp.int32, (S, S), 0)
    col = lax.broadcasted_iota(jnp.int32, (S, S), 1)
    bias = jnp.where(col <= row, 0.0, -1e9).astype(jnp.float32)[None, :, :]

    def masked_softmax(s):                           # (Bt, S, S) float32
        s = s + bias
        s = s - jnp.max(s, axis=-1, keepdims=True)
        e = jnp.exp(s)
        return e * pl.reciprocal(jnp.sum(e, axis=-1, keepdims=True),
                                 approx=True)

    # fused Q/K/V projection: one (Bt*S, D) @ (D, 3D) bf16 MXU push.
    w_qkv = w_ref[layer]                             # (D, 3D) bfloat16
    qkv = jnp.dot(x_bf.reshape(Bt * S, D), w_qkv,
                  preferred_element_type=jnp.float32).reshape(Bt, S, 3 * D)
    q = qkv[..., 0 * D:1 * D]           # attention_scale / sqrt(D) pre-folded
    k = qkv[..., 1 * D:2 * D] + bk
    v = qkv[..., 2 * D:3 * D].astype(jnp.bfloat16)

    # (1) plain dot-product attention: softmax(mask(x x^T)) x
    s1 = jnp.einsum('bqd,bkd->bqk', x_bf, x_bf,
                    preferred_element_type=jnp.float32)
    o1 = jnp.einsum('bqk,bkd->bqd', masked_softmax(s1).astype(jnp.bfloat16),
                    x_bf, preferred_element_type=jnp.float32)

    # (2) scaled dot-product attention with learned Q/K/V projections
    s2 = jnp.einsum('bqd,bkd->bqk', q.astype(jnp.bfloat16),
                    k.astype(jnp.bfloat16),
                    preferred_element_type=jnp.float32)
    o2 = jnp.einsum('bqk,bkd->bqd', masked_softmax(s2).astype(jnp.bfloat16),
                    v, preferred_element_type=jnp.float32)

    # (3) additive attention: scores[i,j] = sum_d tanh(x_i + x_j).
    # Blocked over key tiles so the broadcast intermediate is (Bt,S,Tj,D)
    # rather than (Bt,S,S,D); tanh in bf16 (EUP), D-reduction accumulated f32.
    chunks = []
    for j0 in range(0, S, key_tile):
        xj = x_bf[:, j0:j0 + key_tile, :]                        # (Bt, Tj, D)
        t = jnp.tanh(x_bf[:, :, None, :] + xj[:, None, :, :])    # (Bt,S,Tj,D)
        chunks.append(jnp.sum(t.astype(jnp.float32), axis=-1))   # (Bt, S, Tj)
    s3 = chunks[0] if len(chunks) == 1 else jnp.concatenate(chunks, axis=-1)
    o3 = jnp.einsum('bqk,bkd->bqd', masked_softmax(s3).astype(jnp.bfloat16),
                    x_bf, preferred_element_type=jnp.float32)

    # learned per-feature gates + residual + LayerNorm (norm1) epilogue
    y = x + o1 * g0 + o2 * g1 + o3 * g2
    m = jnp.mean(y, axis=-1, keepdims=True)
    var = jnp.mean(jnp.square(y - m), axis=-1, keepdims=True)
    o_ref[...] = (y - m) * lax.rsqrt(var + eps) * gamma + beta


def attention_encoder(x, params, *, eps=1e-5, batch_tile=1):
    B, S, D = x.shape
    w_qkv = params["w_qkv"]          # (L, D, 3D) bfloat16
    small = params["small"]          # (L, 6, D)  float32
    L = w_qkv.shape[0]
    Bt = batch_tile
    assert B % Bt == 0, "batch must be divisible by batch_tile"

    kernel = functools.partial(_attn_encoder_kernel, eps=eps, input_size=D,
                               key_tile=min(S, 128))
    return pl.pallas_call(
        kernel,
        out_shape=jax.ShapeDtypeStruct((B, S, D), jnp.float32),
        grid=(B // Bt, L),
        in_specs=[
            # activation (read at layer 0 only; same block index across the
            # layer axis -> fetched once per batch block)
            pl.BlockSpec((Bt, S, D), lambda b, l: (b, 0, 0)),
            # fused QKV weights: full-array resident (DMA'd once per kernel)
            pl.BlockSpec((L, D, 3 * D), lambda b, l: (0, 0, 0)),
            # packed small per-layer params: full-array resident
            pl.BlockSpec((L, 6, D), lambda b, l: (0, 0, 0)),
        ],
        out_specs=pl.BlockSpec((Bt, S, D), lambda b, l: (b, 0, 0)),
        compiler_params=pltpu.CompilerParams(
            dimension_semantics=("parallel", "arbitrary"),
            vmem_limit_bytes=32 * 1024 * 1024),
    )(x, w_qkv, small)


# ----------------------------------------------------------------------------
# Deterministic parameter construction + packing for the kernel
# ----------------------------------------------------------------------------

def init_params(key, num_layers, input_size):
    """Per-layer parameters mirroring the PyTorch module ((out, in) layout)."""
    D = input_size
    keys = iter(jax.random.split(key, 10 * num_layers))

    def u(shape, bound):
        return jax.random.uniform(next(keys), shape, jnp.float32, -bound, bound)

    bound = 1.0 / math.sqrt(D)
    layers = []
    for _ in range(num_layers):
        layers.append(dict(
            attention_weights=jnp.ones((3,), jnp.float32),
            attention_scale=jnp.ones((1,), jnp.float32),
            attn_lin_w=jnp.stack([u((D, D), bound) for _ in range(3)]),
            attn_lin_b=jnp.stack([u((D,), bound) for _ in range(3)]),
            wq=u((D, D), bound),
            wk=u((D, D), bound),
            bk=u((D,), bound),
            wv=u((D, D), bound),
            ln_gamma=jnp.ones((D,), jnp.float32),
            ln_beta=jnp.zeros((D,), jnp.float32),
        ))
    return layers


def pack_params(layers):
    """Pre-transpose / fuse / stack per-layer params into the kernel layout."""
    D = layers[0]["wq"].shape[0]
    w_qkv, small = [], []
    for p in layers:
        # gates: relu(attn_lin_i(c_i * ones(D))) == relu(c_i * rowsum(W_i) + b_i)
        c = p["attention_weights"] / jnp.sum(p["attention_weights"])
        gates = jnp.maximum(
            c[:, None] * jnp.sum(p["attn_lin_w"], axis=-1) + p["attn_lin_b"],
            0.0)                                                     # (3, D)
        # fold attention_scale / sqrt(D) into the (transposed) query weights
        wq_t = p["wq"].T * (p["attention_scale"][0] / math.sqrt(D))
        w_qkv.append(jnp.concatenate([wq_t, p["wk"].T, p["wv"].T], axis=1))
        small.append(jnp.concatenate(
            [p["bk"][None, :], gates,
             p["ln_gamma"][None, :], p["ln_beta"][None, :]], axis=0))  # (6, D)
    return dict(w_qkv=jnp.stack(w_qkv).astype(jnp.bfloat16),   # (L, D, 3D)
                small=jnp.stack(small).astype(jnp.float32))    # (L, 6, D)


# ----------------------------------------------------------------------------

if __name__ == "__main__":
    B, S, D, NUM_LAYERS = 2, 8, 16, 2   # batch, seq_length, input_size, layers

    root = jax.random.PRNGKey(0)
    k_param, k_data = jax.random.split(root)
    params = pack_params(init_params(k_param, NUM_LAYERS, D))
    x = jax.random.normal(k_data, (B, S, D), jnp.float32)

    fwd = jax.jit(attention_encoder)
    out = fwd(x, params)
    jax.block_until_ready(out)
    assert out.shape == (B, S, D)
    print("KERNEL_OK")
</pallas_src>

<mosaic_0001>
module attributes {stable_mosaic.version = 11 : i64} {
  func.func @_attn_encoder_kernel(%arg0: i32, %arg1: i32, %arg2: memref<1x8x16xf32, #tpu.memory_space<vmem>>, %arg3: memref<2x16x48xbf16, #tpu.memory_space<vmem>>, %arg4: memref<2x6x16xf32, #tpu.memory_space<vmem>>, %arg5: memref<1x8x16xf32, #tpu.memory_space<vmem>>) attributes {dimension_semantics = [#tpu.dimension_semantics<parallel>, #tpu.dimension_semantics<arbitrary>], iteration_bounds = array<i64: 2, 2>, scalar_prefetch = 0 : i64, scratch_operands = 0 : i64, tpu.core_type = #tpu.core_type<tc>, window_params = [{transform_indices = @transform_0, window_bounds = array<i64: 1, 8, 16>}, {pipeline_mode = #tpu.pipeline_mode<synchronous>, transform_indices = @transform_1, window_bounds = array<i64: 2, 16, 48>}, {pipeline_mode = #tpu.pipeline_mode<synchronous>, transform_indices = @transform_2, window_bounds = array<i64: 2, 6, 16>}, {transform_indices = @transform_3, window_bounds = array<i64: 1, 8, 16>}]} {
    %c0_i32 = arith.constant 0 : i32
    %0 = arith.cmpi eq, %arg1, %c0_i32 : i32
    %1 = arith.extui %0 : i1 to i32
    %c0_i32_0 = arith.constant 0 : i32
    %2 = arith.cmpi ne, %1, %c0_i32_0 : i32
    scf.if %2 {
      %c0_29 = arith.constant 0 : index
      %c0_30 = arith.constant 0 : index
      %c0_31 = arith.constant 0 : index
      %122 = vector.load %arg2[%c0_29, %c0_30, %c0_31] : memref<1x8x16xf32, #tpu.memory_space<vmem>>, vector<1x8x16xf32>
      %c0_32 = arith.constant 0 : index
      %c0_33 = arith.constant 0 : index
      %c0_34 = arith.constant 0 : index
      %123 = vector.load %arg5[%c0_32, %c0_33, %c0_34] : memref<1x8x16xf32, #tpu.memory_space<vmem>>, vector<1x8x16xf32>
      tpu.vector_store %arg5[%c0_32, %c0_33, %c0_34], %122 {strides = array<i32>} : memref<1x8x16xf32, #tpu.memory_space<vmem>>, vector<1x8x16xf32>,
    } else {
    }
    %c0 = arith.constant 0 : index
    %c0_1 = arith.constant 0 : index
    %c0_2 = arith.constant 0 : index
    %3 = vector.load %arg5[%c0, %c0_1, %c0_2] : memref<1x8x16xf32, #tpu.memory_space<vmem>>, vector<1x8x16xf32>
    %4 = arith.truncf %3 : vector<1x8x16xf32> to vector<1x8x16xbf16>
    %5 = arith.index_cast %arg1 : i32 to index
    %c0_3 = arith.constant 0 : index
    %c0_4 = arith.constant 0 : index
    %6 = vector.load %arg4[%5, %c0_3, %c0_4] : memref<2x6x16xf32, #tpu.memory_space<vmem>>, vector<1x6x16xf32>
    %7 = vector.shape_cast %6 : vector<1x6x16xf32> to vector<6x16xf32>
    %8 = vector.extract_strided_slice %7 {offsets = [0, 0], sizes = [1, 16], strides = [1, 1]} : vector<6x16xf32> to vector<1x16xf32>
    %9 = vector.extract_strided_slice %7 {offsets = [1, 0], sizes = [1, 16], strides = [1, 1]} : vector<6x16xf32> to vector<1x16xf32>
    %10 = vector.extract_strided_slice %7 {offsets = [2, 0], sizes = [1, 16], strides = [1, 1]} : vector<6x16xf32> to vector<1x16xf32>
    %11 = vector.extract_strided_slice %7 {offsets = [3, 0], sizes = [1, 16], strides = [1, 1]} : vector<6x16xf32> to vector<1x16xf32>
    %12 = vector.extract_strided_slice %7 {offsets = [4, 0], sizes = [1, 16], strides = [1, 1]} : vector<6x16xf32> to vector<1x16xf32>
    %13 = vector.extract_strided_slice %7 {offsets = [5, 0], sizes = [1, 16], strides = [1, 1]} : vector<6x16xf32> to vector<1x16xf32>
    %14 = tpu.iota {dimensions = array<i32: 0>} : vector<8x8xi32>
    %15 = tpu.iota {dimensions = array<i32: 1>} : vector<8x8xi32>
    %16 = arith.cmpi sle, %15, %14 : vector<8x8xi32>
    %cst = arith.constant 0.000000e+00 : f32
    %cst_5 = arith.constant -1.000000e+09 : f32
    %17 = vector.broadcast %cst : f32 to vector<8x8xf32>
    %18 = vector.broadcast %cst_5 : f32 to vector<8x8xf32>
    %19 = arith.select %16, %17, %18 : vector<8x8xi1>, vector<8x8xf32>
    %20 = vector.shape_cast %19 : vector<8x8xf32> to vector<1x8x8xf32>
    %21 = arith.index_cast %arg1 : i32 to index
    %c0_6 = arith.constant 0 : index
    %c0_7 = arith.constant 0 : index
    %22 = vector.load %arg3[%21, %c0_6, %c0_7] : memref<2x16x48xbf16, #tpu.memory_space<vmem>>, vector<1x16x48xbf16>
    %23 = vector.shape_cast %22 : vector<1x16x48xbf16> to vector<16x48xbf16>
    %24 = vector.shape_cast %4 : vector<1x8x16xbf16> to vector<8x16xbf16>
    %cst_8 = arith.constant dense<0.000000e+00> : vector<8x48xf32>
    %25 = tpu.matmul %24, %23, %cst_8 {dimension_numbers = #tpu.dot_dimension_numbers<[1], [0], [0], [1], [0, 0, 1, 1], [], []>} : vector<8x16xbf16>, vector<16x48xbf16>, vector<8x48xf32> -> vector<8x48xf32>
    %26 = vector.shape_cast %25 : vector<8x48xf32> to vector<1x8x48xf32>
    %27 = vector.extract_strided_slice %26 {offsets = [0, 0, 0], sizes = [1, 8, 16], strides = [1, 1, 1]} : vector<1x8x48xf32> to vector<1x8x16xf32>
    %28 = vector.extract_strided_slice %26 {offsets = [0, 0, 16], sizes = [1, 8, 16], strides = [1, 1, 1]} : vector<1x8x48xf32> to vector<1x8x16xf32>
    %29 = vector.shape_cast %8 : vector<1x16xf32> to vector<1x1x16xf32>
    %30 = vector.broadcast %29 : vector<1x1x16xf32> to vector<1x8x16xf32>
    %31 = arith.addf %28, %30 : vector<1x8x16xf32>
    %32 = vector.extract_strided_slice %26 {offsets = [0, 0, 32], sizes = [1, 8, 16], strides = [1, 1, 1]} : vector<1x8x48xf32> to vector<1x8x16xf32>
    %33 = arith.truncf %32 : vector<1x8x16xf32> to vector<1x8x16xbf16>
    "tpu.trace_start"() <{level = 10 : i32, message = "bqd,bkd->bqk"}> : () -> ()
    %cst_9 = arith.constant dense<0.000000e+00> : vector<1x8x8xf32>
    %34 = tpu.matmul %4, %4, %cst_9 {dimension_numbers = #tpu.dot_dimension_numbers<[2], [2], [1], [1], [0, 0, 0, 1, 1, 1], [0], [0]>} : vector<1x8x16xbf16>, vector<1x8x16xbf16>, vector<1x8x8xf32> -> vector<1x8x8xf32>
    "tpu.trace_stop"() : () -> ()
    %35 = arith.addf %34, %20 : vector<1x8x8xf32>
    %cst_10 = arith.constant dense<0xFF800000> : vector<1x8xf32>
    %36 = vector.multi_reduction <maximumf>, %35, %cst_10 [2] : vector<1x8x8xf32> to vector<1x8xf32>
    %37 = vector.shape_cast %36 : vector<1x8xf32> to vector<1x8x1xf32>
    %38 = vector.broadcast %37 : vector<1x8x1xf32> to vector<1x8x8xf32>
    %39 = arith.subf %35, %38 : vector<1x8x8xf32>
    %40 = math.exp %39 : vector<1x8x8xf32>
    %cst_11 = arith.constant dense<0.000000e+00> : vector<1x8xf32>
    %41 = vector.multi_reduction <add>, %40, %cst_11 [2] : vector<1x8x8xf32> to vector<1x8xf32>
    %42 = vector.shape_cast %41 : vector<1x8xf32> to vector<1x8x1xf32>
    %43 = tpu.reciprocal %42 {approx = true} : vector<1x8x1xf32> -> vector<1x8x1xf32>
    %44 = vector.broadcast %43 : vector<1x8x1xf32> to vector<1x8x8xf32>
    %45 = arith.mulf %40, %44 : vector<1x8x8xf32>
    %46 = arith.truncf %45 : vector<1x8x8xf32> to vector<1x8x8xbf16>
    "tpu.trace_start"() <{level = 10 : i32, message = "bqk,bkd->bqd"}> : () -> ()
    %cst_12 = arith.constant dense<0.000000e+00> : vector<1x8x16xf32>
    %47 = tpu.matmul %46, %4, %cst_12 {dimension_numbers = #tpu.dot_dimension_numbers<[2], [1], [1], [2], [0, 0, 0, 1, 1, 2], [0], [0]>} : vector<1x8x8xbf16>, vector<1x8x16xbf16>, vector<1x8x16xf32> -> vector<1x8x16xf32>
    "tpu.trace_stop"() : () -> ()
    %48 = arith.truncf %27 : vector<1x8x16xf32> to vector<1x8x16xbf16>
    %49 = arith.truncf %31 : vector<1x8x16xf32> to vector<1x8x16xbf16>
    "tpu.trace_start"() <{level = 10 : i32, message = "bqd,bkd->bqk"}> : () -> ()
    %cst_13 = arith.constant dense<0.000000e+00> : vector<1x8x8xf32>
    %50 = tpu.matmul %48, %49, %cst_13 {dimension_numbers = #tpu.dot_dimension_numbers<[2], [2], [1], [1], [0, 0, 0, 1, 1, 1], [0], [0]>} : vector<1x8x16xbf16>, vector<1x8x16xbf16>, vector<1x8x8xf32> -> vector<1x8x8xf32>
    "tpu.trace_stop"() : () -> ()
    %51 = arith.addf %50, %20 : vector<1x8x8xf32>
    %cst_14 = arith.constant dense<0xFF800000> : vector<1x8xf32>
    %52 = vector.multi_reduction <maximumf>, %51, %cst_14 [2] : vector<1x8x8xf32> to vector<1x8xf32>
    %53 = vector.shape_cast %52 : vector<1x8xf32> to vector<1x8x1xf32>
    %54 = vector.broadcast %53 : vector<1x8x1xf32> to vector<1x8x8xf32>
    %55 = arith.subf %51, %54 : vector<1x8x8xf32>
    %56 = math.exp %55 : vector<1x8x8xf32>
    %cst_15 = arith.constant dense<0.000000e+00> : vector<1x8xf32>
    %57 = vector.multi_reduction <add>, %56, %cst_15 [2] : vector<1x8x8xf32> to vector<1x8xf32>
    %58 = vector.shape_cast %57 : vector<1x8xf32> to vector<1x8x1xf32>
    %59 = tpu.reciprocal %58 {approx = true} : vector<1x8x1xf32> -> vector<1x8x1xf32>
    %60 = vector.broadcast %59 : vector<1x8x1xf32> to vector<1x8x8xf32>
    %61 = arith.mulf %56, %60 : vector<1x8x8xf32>
    %62 = arith.truncf %61 : vector<1x8x8xf32> to vector<1x8x8xbf16>
    "tpu.trace_start"() <{level = 10 : i32, message = "bqk,bkd->bqd"}> : () -> ()
    %cst_16 = arith.constant dense<0.000000e+00> : vector<1x8x16xf32>
    %63 = tpu.matmul %62, %33, %cst_16 {dimension_numbers = #tpu.dot_dimension_numbers<[2], [1], [1], [2], [0, 0, 0, 1, 1, 2], [0], [0]>} : vector<1x8x8xbf16>, vector<1x8x16xbf16>, vector<1x8x16xf32> -> vector<1x8x16xf32>
    "tpu.trace_stop"() : () -> ()
    %64 = vector.shape_cast %4 : vector<1x8x16xbf16> to vector<1x8x1x16xbf16>
    %65 = vector.shape_cast %4 : vector<1x8x16xbf16> to vector<1x1x8x16xbf16>
    %66 = vector.broadcast %64 : vector<1x8x1x16xbf16> to vector<1x8x8x16xbf16>
    %67 = vector.broadcast %65 : vector<1x1x8x16xbf16> to vector<1x8x8x16xbf16>
    %68 = arith.addf %66, %67 : vector<1x8x8x16xbf16>
    %69 = math.tanh %68 : vector<1x8x8x16xbf16>
    %70 = arith.extf %69 : vector<1x8x8x16xbf16> to vector<1x8x8x16xf32>
    %cst_17 = arith.constant dense<0.000000e+00> : vector<1x8x8xf32>
    %71 = vector.multi_reduction <add>, %70, %cst_17 [3] : vector<1x8x8x16xf32> to vector<1x8x8xf32>
    %72 = arith.addf %71, %20 : vector<1x8x8xf32>
    %cst_18 = arith.constant dense<0xFF800000> : vector<1x8xf32>
    %73 = vector.multi_reduction <maximumf>, %72, %cst_18 [2] : vector<1x8x8xf32> to vector<1x8xf32>
    %74 = vector.shape_cast %73 : vector<1x8xf32> to vector<1x8x1xf32>
    %75 = vector.broadcast %74 : vector<1x8x1xf32> to vector<1x8x8xf32>
    %76 = arith.subf %72, %75 : vector<1x8x8xf32>
    %77 = math.exp %76 : vector<1x8x8xf32>
    %cst_19 = arith.constant dense<0.000000e+00> : vector<1x8xf32>
    %78 = vector.multi_reduction <add>, %77, %cst_19 [2] : vector<1x8x8xf32> to vector<1x8xf32>
    %79 = vector.shape_cast %78 : vector<1x8xf32> to vector<1x8x1xf32>
    %80 = tpu.reciprocal %79 {approx = true} : vector<1x8x1xf32> -> vector<1x8x1xf32>
    %81 = vector.broadcast %80 : vector<1x8x1xf32> to vector<1x8x8xf32>
    %82 = arith.mulf %77, %81 : vector<1x8x8xf32>
    %83 = arith.truncf %82 : vector<1x8x8xf32> to vector<1x8x8xbf16>
    "tpu.trace_start"() <{level = 10 : i32, message = "bqk,bkd->bqd"}> : () -> ()
    %cst_20 = arith.constant dense<0.000000e+00> : vector<1x8x16xf32>
    %84 = tpu.matmul %83, %4, %cst_20 {dimension_numbers = #tpu.dot_dimension_numbers<[2], [1], [1], [2], [0, 0, 0, 1, 1, 2], [0], [0]>} : vector<1x8x8xbf16>, vector<1x8x16xbf16>, vector<1x8x16xf32> -> vector<1x8x16xf32>
    "tpu.trace_stop"() : () -> ()
    %85 = vector.shape_cast %9 : vector<1x16xf32> to vector<1x1x16xf32>
    %86 = vector.broadcast %85 : vector<1x1x16xf32> to vector<1x8x16xf32>
    %87 = arith.mulf %47, %86 : vector<1x8x16xf32>
    %88 = arith.addf %3, %87 : vector<1x8x16xf32>
    %89 = vector.shape_cast %10 : vector<1x16xf32> to vector<1x1x16xf32>
    %90 = vector.broadcast %89 : vector<1x1x16xf32> to vector<1x8x16xf32>
    %91 = arith.mulf %63, %90 : vector<1x8x16xf32>
    %92 = arith.addf %88, %91 : vector<1x8x16xf32>
    %93 = vector.shape_cast %11 : vector<1x16xf32> to vector<1x1x16xf32>
    %94 = vector.broadcast %93 : vector<1x1x16xf32> to vector<1x8x16xf32>
    %95 = arith.mulf %84, %94 : vector<1x8x16xf32>
    %96 = arith.addf %92, %95 : vector<1x8x16xf32>
    %cst_21 = arith.constant dense<0.000000e+00> : vector<1x8xf32>
    %97 = vector.multi_reduction <add>, %96, %cst_21 [2] : vector<1x8x16xf32> to vector<1x8xf32>
    %98 = vector.shape_cast %97 : vector<1x8xf32> to vector<1x8x1xf32>
    %cst_22 = arith.constant 1.600000e+01 : f32
    %99 = vector.broadcast %cst_22 : f32 to vector<1x8x1xf32>
    %100 = arith.divf %98, %99 : vector<1x8x1xf32>
    %101 = vector.broadcast %100 : vector<1x8x1xf32> to vector<1x8x16xf32>
    %102 = arith.subf %96, %101 : vector<1x8x16xf32>
    %103 = arith.mulf %102, %102 : vector<1x8x16xf32>
    %cst_23 = arith.constant dense<0.000000e+00> : vector<1x8xf32>
    %104 = vector.multi_reduction <add>, %103, %cst_23 [2] : vector<1x8x16xf32> to vector<1x8xf32>
    %105 = vector.shape_cast %104 : vector<1x8xf32> to vector<1x8x1xf32>
    %cst_24 = arith.constant 1.600000e+01 : f32
    %106 = vector.broadcast %cst_24 : f32 to vector<1x8x1xf32>
    %107 = arith.divf %105, %106 : vector<1x8x1xf32>
    %108 = vector.broadcast %100 : vector<1x8x1xf32> to vector<1x8x16xf32>
    %109 = arith.subf %96, %108 : vector<1x8x16xf32>
    %cst_25 = arith.constant 9.99999974E-6 : f32
    %110 = vector.broadcast %cst_25 : f32 to vector<1x8x1xf32>
    %111 = arith.addf %107, %110 : vector<1x8x1xf32>
    %112 = math.rsqrt %111 : vector<1x8x1xf32>
    %113 = vector.broadcast %112 : vector<1x8x1xf32> to vector<1x8x16xf32>
    %114 = arith.mulf %109, %113 : vector<1x8x16xf32>
    %115 = vector.shape_cast %12 : vector<1x16xf32> to vector<1x1x16xf32>
    %116 = vector.broadcast %115 : vector<1x1x16xf32> to vector<1x8x16xf32>
    %117 = arith.mulf %114, %116 : vector<1x8x16xf32>
    %118 = vector.shape_cast %13 : vector<1x16xf32> to vector<1x1x16xf32>
    %119 = vector.broadcast %118 : vector<1x1x16xf32> to vector<1x8x16xf32>
    %120 = arith.addf %117, %119 : vector<1x8x16xf32>
    %c0_26 = arith.constant 0 : index
    %c0_27 = arith.constant 0 : index
    %c0_28 = arith.constant 0 : index
    %121 = vector.load %arg5[%c0_26, %c0_27, %c0_28] : memref<1x8x16xf32, #tpu.memory_space<vmem>>, vector<1x8x16xf32>
    tpu.vector_store %arg5[%c0_26, %c0_27, %c0_28], %120 {strides = array<i32>} : memref<1x8x16xf32, #tpu.memory_space<vmem>>, vector<1x8x16xf32>,
    return
  }
  func.func @transform_0(%arg0: i32, %arg1: i32) -> (i32, i32, i32) {
    %c0_i32 = arith.constant 0 : i32
    %c0_i32_0 = arith.constant 0 : i32
    %c0_i32_1 = arith.constant 0 : i32
    return %arg0, %c0_i32, %c0_i32_0 : i32, i32, i32
  }
  func.func @transform_1(%arg0: i32, %arg1: i32) -> (i32, i32, i32) {
    %c0_i32 = arith.constant 0 : i32
    %c0_i32_0 = arith.constant 0 : i32
    %c0_i32_1 = arith.constant 0 : i32
    %c0_i32_2 = arith.constant 0 : i32
    return %c0_i32, %c0_i32_0, %c0_i32_1 : i32, i32, i32
  }
  func.func @transform_2(%arg0: i32, %arg1: i32) -> (i32, i32, i32) {
    %c0_i32 = arith.constant 0 : i32
    %c0_i32_0 = arith.constant 0 : i32
    %c0_i32_1 = arith.constant 0 : i32
    %c0_i32_2 = arith.constant 0 : i32
    return %c0_i32, %c0_i32_0, %c0_i32_1 : i32, i32, i32
  }
  func.func @transform_3(%arg0: i32, %arg1: i32) -> (i32, i32, i32) {
    %c0_i32 = arith.constant 0 : i32
    %c0_i32_0 = arith.constant 0 : i32
    %c0_i32_1 = arith.constant 0 : i32
    return %arg0, %c0_i32, %c0_i32_0 : i32, i32, i32
  }
}

</mosaic_0001>

<bundles_post_ra>
// kernel: attention_encoder.1
= control target key start
LH: loop header
LB: loop body
LE: loop exit
PB: predicated region body
PF: predicated region fallthrough
CT: control target
= control target key end

     0   :  { %8 = vsyncpa [#allocation3], 0  ;;  %s1671_s0 = inlined_call_operand.vmem [shape: f32[2,8,16], index: 0, kind: input, shape index: {}]   ;;  %s1672_s1 = inlined_call_operand.hbm [shape: bf16[2,16,48], index: 1, kind: input, shape index: {}]   ;;  %s1673_s2 = inlined_call_operand.vmem [shape: f32[2,6,16], index: 2, kind: input, shape index: {}]   ;;  %s1674_s3 = inlined_call_operand.hbm [shape: f32[2,8,16], index: 3, kind: output, shape index: {}]  }
   0x1   :  { %9 = vsyncpa [#allocation4], 0 }
   0x2   :  { %11 = vsyncpa [#allocation4 + $0x1], 0  ;;  %s1338_s12 = smov 0   ;;  %s1340_s13 = smov 0  }
   0x3   :  { %s1342_s14 = smov 0   ;;  %s1344_s15 = smov 0  }
   0x4   :  { %s1346_s16 = smov 0   ;;  %s1348_s17 = smov 0  }
   0x5   :  { %s1350_s18 = smov 0   ;;  %s1352_s19 = smov 0  }
   0x6 LB: > { %s997_s20 = sadd.s32 4294967295, %s1307_s19   ;;  %s998_s21 = sadd.s32 4294967294, %s1307_s19   ;;  %s1307_s19 = sphi %s1352_s19, %s17_s19   ;;  %s1303_s18 = sphi %s1350_s18, %s1684_s18   ;;  %s1299_s17 = sphi %s1348_s17, %s1683_s17   ;;  %s1295_s16 = sphi %s1346_s16, %s1682_s16   ;;  %s1291_s15 = sphi %s1344_s15, %s1681_s15   ;;  %s1287_s14 = sphi %s1342_s14, %s1680_s14   ;;  %s1283_s13 = sphi %s1340_s13, %s1679_s13   ;;  %s1279_s12 = sphi %s1338_s12, %s1678_s12  }
   0x7   : > { %s26_s22 = sadd.s32 1, %s1299_s17  ;;  %s29_s23 = sadd.s32 1, %s1303_s18 }
   0x8   : > { %p27_p0 = scmp.ge.s32.totalorder %s26_s22, 2  ;;  %s104_s24 = sadd.s32 1, %s1287_s14 }
   0x9   : > { %p114_p1 = scmp.ne.s32.totalorder %s1287_s14, %s1283_s13  ;;  %p115_p2 = scmp.eq.s32.totalorder %s997_s20, 3 }
   0xa   : > { %s1686_s22 = smov (%p27_p0, %s26_s22), 0  ;;  %s1688_s23 = smov (!%p27_p0, %s29_s23), %s1303_s18 }
   0xb   : > { %p1388_p3 = por %p115_p2, %p114_p1  ;;  %p120_p4 = scmp.ne.s32.totalorder %s1283_s13, %s1279_s12 }
   0xc   : > { %p31_p5 = scmp.ge.s32.totalorder %s1688_s23, 2  ;;  %p121_p6 = scmp.eq.s32.totalorder %s998_s21, 3 }
   0xd   : > { %p999_p7 = scmp.ge.s32.totalorder %s1307_s19, 1  ;;  %p128_p8 = scmp.lt.s32.totalorder %s1307_s19, 5 }
   0xe   : > { %s1690_s23 = smov (%p31_p5, %s1688_s23), 0  ;;  %p1398_p9 = por %p121_p6, %p120_p4 }
   0xf   : > { %p1402_p10 = pnand %p999_p7, %p128_p8  ;;  %s101_s28 = ssub.s32 %s1303_s18, %s1690_s23 }
  0x10   : > { %p102_p11 = scmp.eq.s32.totalorder %s101_s28, 0  ;;  %p1052_p13 = scmp.eq.s32.totalorder %s997_s20, 0 }
  0x11   : > { %p1044_p12 = pneg %p1402_p10  ;;  %s139_s4 = sshll.u32 %s1672_s1, 4  ;;  %s140_s4 = int_to_ptr.hbm [resolvable:$true] %s139_s4 }
  0x12   : > { %s1414_s5 = scalar_select %p102_p11, %s1287_s14, %s104_s24  }
  0x13   : > { %s1309_s6 = smov [#allocation2]   ;;  %p1045_p0 = pnand %p1052_p13, %p1044_p12 }
  0x14   : > { %s141_s7 = sshll.u32 %s1309_s6, 4  ;;  %s1310_s8 = smov 64   ;;  %s142_s7 = int_to_ptr.vmem [resolvable:$true] %s141_s7 }
  0x15   : > { %s1311_s9 = smov 4   ;;  %167 = sbr.rel (%p1402_p10) target bundleno = 1358 (0x54e), region = 32 }
  0x16   : > { %1047 = dma.hbm_to_vmem [thread:$0]  (!%p1045_p0), %s140_s4, 256, %s142_s7, [#allocation3], %s1310_s8, %s1310_s8, %s1311_s9  }
  0x1a   : > { %1270 = dma.done.wait (%p1052_p13), [#allocation3], 256  }
  0x1b   : > { %1272 = vsyncadd (%p1052_p13), [#allocation3], 4294967040  ;;  %s188_s10 = sand.u32 1, %s1283_s13   ;;  %p191_p1 = scmp.lt.s32.totalorder %s1295_s16, 1 }
  0x1c   : > { %s1004_s11 = sshll.u32 %s188_s10, 3  ;;  %p1006_p2 = scmp.ne.s32.totalorder %s1291_s15, 0 }
  0x1d   : > { %s192_s20 = scalar_select %p191_p1, %s1295_s16, 1 }
  0x1e   : > { %s1426_s30 = scalar_lea.vmem [#allocation5], %s1004_s11  ;;  %199 = sbr.rel (%p1006_p2) target bundleno = 37 (0x25), region = 40 }
  0x1f   : > { %s1005_s21 = sshll.u32 %s192_s20, 3 }
  0x20   : > { %s194_s29 = scalar_lea.vmem %s1671_s0, %s1005_s21 }
  0x23   : > { %v200_v0 = vld [vmem:[%s194_s29] sm:$0xff]  ;;  %vm201_vm0 = vcmask 130048  }
  0x24   : > { %202 = vst.msk [vmem:[%s1426_s30] sm:$0xff] %vm201_vm0, %v200_v0 }
  0x25 PF: > { %v208_v1 = vlaneseq  ;;  %s1007_s27 = sshll.u32 %s1291_s15, 3  ;;  %vm357_vm1 = vcmask 1040384   ;;  %vm361_vm2 = vcmask 1041409   ;;  %vm365_vm3 = vcmask 1042434   ;;  %s1313_s15 = smov 16  }
  0x26   : > { %s206_s7 = scalar_lea.vmem %s1673_s2, %s1007_s27  ;;  %s216_s8 = scalar_lea.vmem [#allocation2], %s1007_s27  ;;  %vm225_vm5 = vcmask 130048   ;;  %v1312_v10 = vmov -1e+09   ;;  %vm369_vm6 = vcmask 1043459   ;;  %vm626_vm7 = vcmask 1044484  }
  0x27   : > { %v209_v4 = vshrl.u32 %v208_v1, 7  ;;  %v1441_v5 = vand.u32 127, %v208_v1  ;;  %v1443_v6 = vld [vmem:[%s206_s7] sm:$0x3f]  ;;  %s1315_s9 = smov 112   ;;  %vm628_vm8 = vcmask 1045509  }
  0x28   : > { %v1037_v7 = vld [vmem:[%s216_s8] sm:$0xff]  ;;  %v242_v8 = vperm.slane %v1443_v6, 0  ;;  %vm630_vm9 = vcmask 1046534   ;;  %vm632_vm10 = vcmask 1047559   ;;  %vm262_vm11 = vcmask 64512   ;;  %s1316_s11 = smov 96  }
  0x29   : > { %1128 = vset.pattern.permute.xlu2 %v209_v4  ;;  %vm212_vm4 = vcmp.le.s32.totalorder %v1441_v5, %v209_v4  ;;  %236 = vmatpush.bf16.msra.mxu0 %v1037_v7  ;;  %vm278_vm12 = vcmask 1043456   ;;  %s1033_s20 = sshll.u32 %s1295_s16, 3  ;;  %s908_s29 = sshll.u32 %s1426_s30, 4  ;;  %s909_s29 = int_to_ptr.vmem [resolvable:$true] %s908_s29 }
  0x2a   : > { %v1448_v11 = vsel %vm212_vm4, 0.0, %v1312_v10  ;;  %244 = vrot.lane.b32.xlu0 %v242_v8, %s1313_s15  ;;  %s906_s28 = scalar_lea.hbm %s1674_s3, %s1033_s20  ;;  %s896_s16 = scalar_lea.sflag [#allocation4], %s188_s10 }
  0x2b   : > { %v1432_v2 = vld [vmem:[%s1426_s30] sm:$0xff]  ;;  %1129 = vset.pattern.permute.xlu0 %v209_v4  ;;  %v511_v18 = vperm.slane %v1448_v11, 0  ;;  %v518_v40 = vperm.slane %v1448_v11, 1  ;;  %v525_v61 = vperm.slane %v1448_v11, 2  ;;  %s910_s27 = sshll.u32 %s906_s28, 4  ;;  %s1229_s15 = scalar_lea.hbm %s1674_s3, 16  ;;  %s911_s27 = int_to_ptr.hbm [resolvable:$true] %s910_s27 }
  0x2c   : > { %v1439_v3 = vpack.c.bf16 %v1432_v2, %v1432_v2  ;;  %s1223_s4 = sshra.s32 %s911_s27, 4  ;;  %s1224_s4 = int_to_ptr.hbm [resolvable:$true] %s1223_s4 }
  0x2d   : > { %s1225_s6 = scalar_lea.hbm %s1224_s4, 8  ;;  %p1230_p7 = scmp.lt.s32.totalorder %s1224_s4, %s1674_s3 }
  0x2e   : > { %v356_v9 = vrot.slane %v1439_v3, 3  ;;  %1014 = vmatmul.msk.bf16.vlgmr.msra.gmra.mxu0 %vm225_vm5, %v1439_v3  ;;  %v1460_v37 = vunpack.c.l.bf16 %v1439_v3  ;;  %p1226_p4 = scmp.ne.s32.totalorder %s1224_s4, %s1225_s6  ;;  %p1231_p8 = scmp.lt.s32.totalorder %s1229_s15, %s1225_s6 }
  0x30   : > { %v359_v12 = vsel %vm357_vm1, %v1439_v3, %v356_v9  ;;  %v362_v13 = vsel %vm361_vm2, %v1439_v3, %v356_v9  ;;  %v366_v14 = vsel %vm365_vm3, %v1439_v3, %v356_v9  ;;  %v370_v47 = vsel %vm369_vm6, %v1439_v3, %v356_v9  ;;  %p1227_p5 = pnand %p1226_p4, %p1388_p3  ;;  %p1232_p10 = por %p1231_p8, %p1230_p7 }
  0x31   : > { %v374_v15 = vunpack.i.h.s16 %v359_v12  ;;  %v364_v16 = vrot.slane %v362_v13, 1  ;;  %v1019_v17 = vpack.i.b16 %v359_v12, %v359_v12  ;;  %v368_v19 = vrot.slane %v366_v14, 2  ;;  %516 = vperm.xlu2 %1128, %v511_v18  }
  0x32   : > { %v372_v53 = vrot.slane %v370_v47, 3  ;;  %v532_v14 = vperm.slane %v1448_v11, 3  ;;  %p1228_p6 = pneg %p1227_p5 }
  0x33   : > { %v382_v20 = vpack.i.b16 %v374_v15, %v374_v15  ;;  %v1020_v21 = vpack.i.b16 %v364_v16, %v364_v16  ;;  %v389_v22 = vperm.slane %v1019_v17, 0  ;;  %v376_v23 = vunpack.i.h.s16 %v364_v16 }
  0x34   : > { %v1021_v24 = vpack.i.b16 %v368_v19, %v368_v19  ;;  %v378_v30 = vunpack.i.h.s16 %v368_v19  ;;  %v1022_v1 = vpack.i.b16 %v372_v53, %v372_v53  ;;  %v380_v10 = vunpack.i.h.s16 %v372_v53  ;;  %p1233_p11 = pnand %p1232_p10, %p1228_p6 }
  0x35   : > { %v390_v25 = vperm.slane %v382_v20, 0  ;;  %v391_v26 = vperm.slane %v1020_v21, 0  ;;  %v398_v27 = vpack.i.b16 %v389_v22, %v389_v22  ;;  %v384_v28 = vpack.i.b16 %v376_v23, %v376_v23 }
  0x36   : > { %v393_v29 = vperm.slane %v1021_v24, 0  ;;  %v386_v43 = vpack.i.b16 %v378_v30, %v378_v30  ;;  %v395_v9 = vperm.slane %v1022_v1, 0  ;;  %v388_v20 = vpack.i.b16 %v380_v10, %v380_v10 }
  0x37   : > { %v402_v31 = vpack.i.b16 %v390_v25, %v390_v25  ;;  %v406_v32 = vpack.i.b16 %v391_v26, %v391_v26  ;;  %v400_v33 = vperm.slane %v398_v27, 0  ;;  %v392_v34 = vperm.slane %v384_v28, 0 }
  0x38   : > { %v414_v35 = vpack.i.b16 %v393_v29, %v393_v29  ;;  %v394_v52 = vperm.slane %v386_v43, 0  ;;  %v422_v19 = vpack.i.b16 %v395_v9, %v395_v9  ;;  %v396_v28 = vperm.slane %v388_v20, 0 }
  0x39   : > { %v404_v36 = vperm.slane %v402_v31, 0  ;;  %v408_v38 = vperm.slane %v406_v32, 0  ;;  %v429_v39 = vunpack.c.l.bf16 %v400_v33  ;;  %v410_v42 = vpack.i.b16 %v392_v34, %v392_v34  ;;  %523 = vperm.xlu2 %1128, %v518_v40  }
  0x3a   : > { %v416_v41 = vperm.slane %v414_v35, 0  ;;  %v418_v62 = vpack.i.b16 %v394_v52, %v394_v52  ;;  %v424_v27 = vperm.slane %v422_v19, 0  ;;  %v539_v31 = vperm.slane %v1448_v11, 4 }
  0x3b   : > { %v430_v44 = vunpack.c.l.bf16 %v404_v36  ;;  %v431_v45 = vunpack.c.l.bf16 %v408_v38  ;;  %v438_v46 = vadd.f32 %v1460_v37, %v429_v39  ;;  %v412_v57 = vperm.slane %v410_v42, 0 }
  0x3c   : > { %v433_v48 = vunpack.c.l.bf16 %v416_v41  ;;  %v420_v4 = vperm.slane %v418_v62, 0  ;;  %v435_v34 = vunpack.c.l.bf16 %v424_v27  ;;  %v426_v35 = vpack.i.b16 %v396_v28, %v396_v28 }
  0x3d   : > { %v439_v49 = vadd.f32 %v1460_v37, %v430_v44  ;;  %v440_v50 = vadd.f32 %v1460_v37, %v431_v45  ;;  %v446_v51 = vpack.c.bf16 %v438_v46, %v438_v46  ;;  %v432_v0 = vunpack.c.l.bf16 %v412_v57 }
  0x3e   : > { %v442_v56 = vadd.f32 %v1460_v37, %v433_v48  ;;  %v434_v16 = vunpack.c.l.bf16 %v420_v4  ;;  %v444_v41 = vadd.f32 %v1460_v37, %v435_v34  ;;  %v428_v42 = vperm.slane %v426_v35, 0 }
  0x3f   : > { %v447_v54 = vpack.c.bf16 %v439_v49, %v439_v49  ;;  %v448_v55 = vpack.c.bf16 %v440_v50, %v440_v50  ;;  %v454_v60 = vunpack.c.l.bf16 %v446_v51  ;;  %v441_v8 = vadd.f32 %v1460_v37, %v432_v0 }
  0x40   : > { %v450_v63 = vpack.c.bf16 %v442_v56, %v442_v56  ;;  %v443_v26 = vadd.f32 %v1460_v37, %v434_v16  ;;  %v546_v45 = vperm.slane %v1448_v11, 5  ;;  %v452_v46 = vpack.c.bf16 %v444_v41, %v444_v41 }
  0x41   : > { %v455_v58 = vunpack.c.l.bf16 %v447_v54  ;;  %v456_v59 = vunpack.c.l.bf16 %v448_v55  ;;  %530 = vperm.xlu2 %1128, %v525_v61   ;;  %v449_v18 = vpack.c.bf16 %v441_v8, %v441_v8  ;;  %v436_v47 = vunpack.c.l.bf16 %v428_v42 }
  0x42   : > { %v458_v7 = vunpack.c.l.bf16 %v450_v63  ;;  %v451_v33 = vpack.c.bf16 %v443_v26, %v443_v26  ;;  %v460_v50 = vunpack.c.l.bf16 %v452_v46  ;;  %v553_v54 = vperm.slane %v1448_v11, 6 }
  0x43   : > { %1133 = vtanh.f32 %v455_v58  ;;  %v457_v25 = vunpack.c.l.bf16 %v449_v18  ;;  %v445_v51 = vadd.f32 %v1460_v37, %v436_v47  ;;  %v560_v61 = vperm.slane %v1448_v11, 7 }
  0x44   : > { %1135 = vtanh.f32 %v456_v59  ;;  %v459_v40 = vunpack.c.l.bf16 %v451_v33 }
  0x45   : > { %1137 = vtanh.f32 %v454_v60  ;;  %v453_v55 = vpack.c.bf16 %v445_v51, %v445_v51 }
  0x46   : > { %1139 = vtanh.f32 %v458_v7 }
  0x47   : > { %1141 = vtanh.f32 %v457_v25  ;;  %v461_v58 = vunpack.c.l.bf16 %v453_v55 }
  0x48   : > { %1143 = vtanh.f32 %v459_v40 }
  0x49   : > { %v1134_v12 = vpop.eup %1133  ;;  %537 = vperm.xlu2 %1128, %v532_v14   ;;  %1145 = vtanh.f32 %v460_v50 }
  0x4a   : > { %v1136_v13 = vpop.eup %1135  ;;  %v471_v15 = vpack.c.bf16 %v1134_v12, %v1134_v12  ;;  %1147 = vtanh.f32 %v461_v58 }
  0x4b   : > { %v1138_v17 = vpop.eup %1137  ;;  %v472_v22 = vpack.c.bf16 %v1136_v13, %v1136_v13  ;;  %v1314_v13 = vmov 0  }
  0x4c   : > { %v479_v21 = vunpack.c.l.bf16 %v471_v15  ;;  %v470_v24 = vpack.c.bf16 %v1138_v17, %v1138_v17  ;;  %v1140_v30 = vpop.eup %1139  ;;  %1131 = vset.pattern.permute.xlu1 %v1314_v13 }
  0x4d   : > { %v480_v29 = vunpack.c.l.bf16 %v472_v22  ;;  %v474_v38 = vpack.c.bf16 %v1140_v30, %v1140_v30  ;;  %v1142_v44 = vpop.eup %1141 }
  0x4e   : > { %v489_v23 = vsel %vm225_vm5, %v479_v21, 0.0  ;;  %v478_v32 = vunpack.c.l.bf16 %v470_v24  ;;  %v473_v49 = vpack.c.bf16 %v1142_v44, %v1142_v44  ;;  %v1144_v53 = vpop.eup %1143 }
  0x4f   : > { %490 = vadd.xlane.f32.xlu1 %v489_v23  ;;  %v492_v36 = vsel %vm225_vm5, %v480_v29, 0.0  ;;  %v482_v43 = vunpack.c.l.bf16 %v474_v38  ;;  %v475_v57 = vpack.c.bf16 %v1144_v53, %v1144_v53  ;;  %v1146_v60 = vpop.eup %1145 }
  0x50   : > { %v486_v39 = vsel %vm225_vm5, %v478_v32, 0.0  ;;  %v481_v52 = vunpack.c.l.bf16 %v473_v49  ;;  %v476_v37 = vpack.c.bf16 %v1146_v60, %v1146_v60  ;;  %v1148_v0 = vpop.eup %1147 }
  0x51   : > { %544 = vperm.xlu2 %1128, %v539_v31   ;;  %v498_v48 = vsel %vm225_vm5, %v482_v43, 0.0  ;;  %v483_v59 = vunpack.c.l.bf16 %v475_v57  ;;  %v477_v4 = vpack.c.bf16 %v1148_v0, %v1148_v0 }
  0x52   : > { %v495_v56 = vsel %vm225_vm5, %v481_v52, 0.0  ;;  %v484_v63 = vunpack.c.l.bf16 %v476_v37 }
  0x53   : > { %v501_v62 = vsel %vm225_vm5, %v483_v59, 0.0  ;;  %v485_v7 = vunpack.c.l.bf16 %v477_v4 }
  0x54   : > { %487 = vadd.xlane.f32.xlu0 %v486_v39  ;;  %v504_v1 = vsel %vm225_vm5, %v484_v63, 0.0 }
  0x55   : > { %v507_v8 = vsel %vm225_vm5, %v485_v7, 0.0 }
  0x57   : > { %493 = vadd.xlane.f32.xlu1 %v492_v36 }
  0x59   : > { %551 = vperm.xlu2 %1128, %v546_v45  }
  0x5f   : > { %499 = vadd.xlane.f32.xlu1 %v498_v48  ;;  %v227_v48 = vsel %vm225_vm5, %v1439_v3, 0 }
  0x60   : > { %256 = vmatpush.bf16.xpose.msra.mxu1 %v227_v48 }
  0x61   : > { %558 = vperm.xlu2 %1128, %v553_v54  }
  0x67   : > { %496 = vadd.xlane.f32.xlu1 %v495_v56  ;;  %1015 = vmatmul.msk.bf16.vlgmr.msra.gmra.mxu1 %vm225_vm5, %v1439_v3 }
  0x68   : > { %565 = vperm.xlu0 %1129, %v560_v61  }
  0x69   : > { %1130 = vset.pattern.permute.xlu2 %v1314_v13 }
  0x6f   : > { %502 = vadd.xlane.f32.xlu1 %v501_v62 }
  0x70   : > { %1132 = vset.pattern.permute.xlu0 %v1314_v13 }
  0x77   : > { %505 = vadd.xlane.f32.xlu1 %v504_v1 }
  0x7f   : > { %508 = vadd.xlane.f32.xlu1 %v507_v8 }
  0x8b   : > { %v517_v9 = vpop.permute.xlu2 %516 }
  0x93   : > { %v524_v17 = vpop.permute.xlu2 %523 }
  0x9b   : > { %v531_v20 = vpop.permute.xlu2 %530 }
  0x9c   : > { %v245_v10 = vpop.permute.xlu0 %244 }
  0xa3   : > { %v538_v22 = vpop.permute.xlu2 %537 }
  0xab   : > { %v238_v12 = vpop.f32.mrf.mxu0  ;;  %v545_v26 = vpop.permute.xlu2 %544 }
  0xac   : > { %v247_v14 = vadd.f32 %v245_v10, %v238_v12  ;;  %v1509_v45 = vpack.c.bf16 %v238_v12, %v238_v12 }
  0xae   : > { %v294_v15 = vpack.c.bf16 %v247_v14, %v247_v14 }
  0xb0   : > { %v296_v16 = vunpack.c.l.b16 %v294_v15 }
  0xb2   : > { %v297_v18 = vpack.c.b16 %v296_v16, %v296_v16 }
  0xb3   : > { %v240_v19 = vpop.f32.mrf.mxu0  ;;  %v552_v32 = vpop.permute.xlu2 %551 }
  0xb4   : > { %298 = vrot.lane.b32.xlu1 %v297_v18, %s1315_s9 }
  0xbb   : > { %v559_v35 = vpop.permute.xlu2 %558 }
  0xc2   : > { %v491_v21 = vpop.xlane.xlu1 %490 }
  0xc3   : > { %v1492_v29 = vadd.f32 %v524_v17, %v491_v21 }
  0xc7   : > { %v488_v24 = vpop.xlane.xlu0 %487 }
  0xc8   : > { %v1487_v25 = vadd.f32 %v517_v9, %v488_v24 }
  0xca   : > { %v494_v23 = vpop.xlane.xlu1 %493  ;;  %592 = vperm.xlu2 %1130, %v1487_v25  }
  0xcb   : > { %v577_v31 = vadd.f32 %v531_v20, %v494_v23 }
  0xd2   : > { %v500_v27 = vpop.xlane.xlu1 %499  ;;  %595 = vperm.xlu2 %1130, %v1492_v29  }
  0xd3   : > { %v1490_v28 = vadd.f32 %v545_v26, %v500_v27 }
  0xd5   : > { %604 = vperm.xlu1 %1131, %v1490_v28  }
  0xda   : > { %v497_v30 = vpop.xlane.xlu1 %496  ;;  %598 = vperm.xlu2 %1130, %v577_v31   ;;  %v566_v40 = vpop.permute.xlu0 %565 }
  0xdb   : > { %v1496_v34 = vadd.f32 %v538_v22, %v497_v30 }
  0xe2   : > { %v503_v33 = vpop.xlane.xlu1 %502  ;;  %601 = vperm.xlu2 %1130, %v1496_v34  }
  0xe3   : > { %v1501_v39 = vadd.f32 %v552_v32, %v503_v33 }
  0xea   : > { %v506_v36 = vpop.xlane.xlu1 %505  ;;  %607 = vperm.xlu2 %1130, %v1501_v39  }
  0xeb   : > { %v1499_v38 = vadd.f32 %v559_v35, %v506_v36 }
  0xed   : > { %610 = vperm.xlu1 %1131, %v1499_v38  }
  0xf2   : > { %v509_v41 = vpop.xlane.xlu1 %508 }
  0xf3   : > { %v1505_v42 = vadd.f32 %v566_v40, %v509_v41 }
  0xf5   : > { %613 = vperm.xlu0 %1132, %v1505_v42  }
 0x124   : > { %v593_v46 = vpop.permute.xlu2 %592 }
 0x125   : > { %v615_v55 = vperm.slane %v593_v46, %v1441_v5 }
 0x126   : > { %v299_v43 = vpop.permute.xlu1 %298 }
 0x127   : > { %v304_v44 = vsel %vm225_vm5, %v299_v43, 0 }
 0x128   : > { %313 = vmatpush.bf16.xpose.msra.mxu3 %v304_v44 }
 0x12c   : > { %v596_v47 = vpop.permute.xlu2 %595 }
 0x12d   : > { %v616_v52 = vperm.slane %v596_v47, %v1441_v5 }
 0x12f   : > { %1017 = vmatmul.msk.bf16.vlgmr.msra.gmra.mxu3 %vm225_vm5, %v1509_v45  ;;  %v623_v59 = vsel %vm361_vm2, %v616_v52, %v615_v55 }
 0x134   : > { %v599_v49 = vpop.permute.xlu2 %598 }
 0x135   : > { %v617_v53 = vperm.slane %v599_v49, %v1441_v5 }
 0x137   : > { %v624_v61 = vsel %vm365_vm3, %v617_v53, %v623_v59 }
 0x13c   : > { %v602_v50 = vpop.permute.xlu2 %601 }
 0x13d   : > { %v618_v56 = vperm.slane %v602_v50, %v1441_v5 }
 0x13f   : > { %v625_v37 = vsel %vm369_vm6, %v618_v56, %v624_v61 }
 0x144   : > { %v608_v54 = vpop.permute.xlu2 %607 }
 0x145   : > { %v620_v60 = vperm.slane %v608_v54, %v1441_v5 }
 0x147   : > { %v605_v51 = vpop.permute.xlu1 %604 }
 0x148   : > { %v619_v58 = vperm.slane %v605_v51, %v1441_v5 }
 0x14a   : > { %v627_v63 = vsel %vm626_vm7, %v619_v58, %v625_v37 }
 0x14b   : > { %v629_v1 = vsel %vm628_vm8, %v620_v60, %v627_v63 }
 0x15f   : > { %v611_v57 = vpop.permute.xlu1 %610 }
 0x160   : > { %v621_v62 = vperm.slane %v611_v57, %v1441_v5 }
 0x162   : > { %v631_v7 = vsel %vm630_vm9, %v621_v62, %v629_v1 }
 0x167   : > { %v614_v0 = vpop.permute.xlu0 %613 }
 0x168   : > { %v622_v4 = vperm.slane %v614_v0, %v1441_v5 }
 0x16a   : > { %v633_v8 = vsel %vm632_vm10, %v622_v4, %v631_v7 }
 0x16b   : > { %v635_v9 = vsel %vm262_vm11, %v633_v8, -inf }
 0x16c   : > { %636 = vmax.xlane.f32.xlu2 %v635_v9 }
 0x1b2   : > { %v315_v10 = vpop.f32.mrf.mxu3 }
 0x1b3   : > { %v1534_v12 = vadd.f32 %v315_v10, %v1448_v11 }
 0x1b5   : > { %v319_v13 = vsel %vm262_vm11, %v1534_v12, -inf }
 0x1b6   : > { %320 = vmax.xlane.f32.xlu2 %v319_v13 }
 0x1ba   : > { %v317_v14 = vpop.f32.mrf.mxu3 }
 0x1df   : > { %v637_v15 = vpop.xlane.xlu2 %636 }
 0x1e0   : > { %v641_v16 = vperm.slane %v637_v15, 2  ;;  %v639_v17 = vperm.slane %v637_v15, 0  ;;  %v643_v20 = vperm.slane %v637_v15, 4  ;;  %v640_v21 = vperm.slane %v637_v15, 1 }
 0x1e1   : > { %v645_v30 = vperm.slane %v637_v15, 6  ;;  %v642_v33 = vperm.slane %v637_v15, 3  ;;  %v644_v41 = vperm.slane %v637_v15, 5  ;;  %v646_v48 = vperm.slane %v637_v15, 7 }
 0x1e2   : > { %v657_v18 = vsub.f32 %v577_v31, %v641_v16  ;;  %v655_v19 = vsub.f32 %v1487_v25, %v639_v17  ;;  %v659_v24 = vsub.f32 %v1490_v28, %v643_v20  ;;  %v656_v26 = vsub.f32 %v1492_v29, %v640_v21  ;;  %v258_v31 = vpop.f32.mrf.mxu1 }
 0x1e3   : > { %v661_v25 = vsub.f32 %v1499_v38, %v645_v30  ;;  %v658_v28 = vsub.f32 %v1496_v34, %v642_v33  ;;  %v660_v38 = vsub.f32 %v1501_v39, %v644_v41  ;;  %v662_v50 = vsub.f32 %v1505_v42, %v646_v48 }
 0x1e4   : > { %v667_v22 = vmul.f32 1.442695, %v657_v18  ;;  %v663_v23 = vmul.f32 1.442695, %v655_v19  ;;  %v671_v27 = vmul.f32 1.442695, %v659_v24  ;;  %v259_v39 = vadd.f32 %v258_v31, %v1448_v11 }
 0x1e5   : > { %v665_v32 = vmul.f32 1.442695, %v656_v26  ;;  %v675_v29 = vmul.f32 1.442695, %v661_v25  ;;  %v669_v40 = vmul.f32 1.442695, %v658_v28 }
 0x1e6   : > { %1149 = vpow2.f32 %v667_v22  ;;  %v673_v47 = vmul.f32 1.442695, %v660_v38  ;;  %v677_v51 = vmul.f32 1.442695, %v662_v50  ;;  %v263_v54 = vsel %vm262_vm11, %v259_v39, -inf }
 0x1e7   : > { %1151 = vpow2.f32 %v663_v23 }
 0x1e8   : > { %1153 = vpow2.f32 %v671_v27 }
 0x1e9   : > { %1155 = vpow2.f32 %v665_v32 }
 0x1ea   : > { %1157 = vpow2.f32 %v675_v29  ;;  %v260_v46 = vpop.f32.mrf.mxu1 }
 0x1eb   : > { %1159 = vpow2.f32 %v669_v40 }
 0x1ec   : > { %v1541_v35 = vpop.eup %1149  ;;  %1161 = vpow2.f32 %v673_v47 }
 0x1ed   : > { %v1543_v36 = vpop.eup %1151  ;;  %694 = vperm.xlu0 %1132, %v1541_v35   ;;  %1163 = vpow2.f32 %v677_v51 }
 0x1ee   : > { %688 = vperm.xlu1 %1131, %v1543_v36   ;;  %v1549_v43 = vpop.eup %1153 }
 0x1ef   : > { %v1551_v44 = vpop.eup %1155 }
 0x1f0   : > { %v1158_v49 = vpop.eup %1157 }
 0x1f1   : > { %v1160_v34 = vpop.eup %1159 }
 0x1f2   : > { %v1557_v52 = vpop.eup %1161 }
 0x1f3   : > { %v1560_v53 = vpop.eup %1163 }
 0x1f5   : > { %700 = vperm.xlu0 %1132, %v1549_v43  }
 0x1f6   : > { %691 = vperm.xlu1 %1131, %v1551_v44  }
 0x1fd   : > { %706 = vperm.xlu0 %1132, %v1158_v49  }
 0x1fe   : > { %697 = vperm.xlu1 %1131, %v1160_v34  }
 0x206   : > { %703 = vperm.xlu1 %1131, %v1557_v52  }
 0x20e   : > { %709 = vperm.xlu1 %1131, %v1560_v53  }
 0x227   : > { %264 = vmax.xlane.f32.xlu0 %v263_v54 }
 0x25f   : > { %v695_v57 = vpop.permute.xlu0 %694 }
 0x260   : > { %v689_v55 = vpop.permute.xlu1 %688  ;;  %v713_v37 = vperm.slane %v695_v57, %v1441_v5 }
 0x261   : > { %v711_v60 = vperm.slane %v689_v55, %v1441_v5 }
 0x267   : > { %v701_v42 = vpop.permute.xlu0 %700 }
 0x268   : > { %v692_v56 = vpop.permute.xlu1 %691  ;;  %v715_v4 = vperm.slane %v701_v42, %v1441_v5 }
 0x269   : > { %v712_v59 = vperm.slane %v692_v56, %v1441_v5 }
 0x26b   : > { %v719_v61 = vsel %vm361_vm2, %v712_v59, %v711_v60 }
 0x26c   : > { %v720_v11 = vsel %vm365_vm3, %v713_v37, %v719_v61 }
 0x26f   : > { %v707_v7 = vpop.permute.xlu0 %706 }
 0x270   : > { %v698_v58 = vpop.permute.xlu1 %697  ;;  %v717_v10 = vperm.slane %v707_v7, %v1441_v5 }
 0x271   : > { %v714_v62 = vperm.slane %v698_v58, %v1441_v5 }
 0x273   : > { %v721_v0 = vsel %vm369_vm6, %v714_v62, %v720_v11  ;;  %v332_v11 = vunpack.c.l.b16 %v1509_v45 }
 0x274   : > { %v722_v8 = vsel %vm626_vm7, %v715_v4, %v721_v0 }
 0x278   : > { %v704_v63 = vpop.permute.xlu1 %703 }
 0x279   : > { %v716_v1 = vperm.slane %v704_v63, %v1441_v5  ;;  %v321_v63 = vpop.xlane.xlu2 %320 }
 0x27a   : > { %v322_v45 = vsub.f32 %v1534_v12, %v321_v63 }
 0x27b   : > { %v723_v9 = vsel %vm628_vm8, %v716_v1, %v722_v8  ;;  %v333_v1 = vpack.c.b16 %v332_v11, %v332_v11  ;;  %v1317_v11 = vmov 16.0  }
 0x27c   : > { %v724_v15 = vsel %vm630_vm9, %v717_v10, %v723_v9 }
 0x280   : > { %v710_v13 = vpop.permute.xlu1 %709 }
 0x281   : > { %v718_v14 = vperm.slane %v710_v13, %v1441_v5 }
 0x283   : > { %v725_v16 = vsel %vm632_vm10, %v718_v14, %v724_v15 }
 0x284   : > { %v727_v17 = vsel %vm262_vm11, %v725_v16, 0.0 }
 0x285   : > { %728 = vadd.xlane.f32.xlu1 %v727_v17 }
 0x29a   : > { %v265_v18 = vpop.xlane.xlu0 %264 }
 0x29b   : > { %v266_v19 = vsub.f32 %v259_v39, %v265_v18 }
 0x29d   : > { %v267_v20 = vmul.f32 1.442695, %v266_v19 }
 0x29f   : > { %1165 = vpow2.f32 %v267_v20 }
 0x2a5   : > { %v1581_v21 = vpop.eup %1165 }
 0x2a6   : > { %v269_v22 = vsel %vm262_vm11, %v1581_v21, 0.0 }
 0x2a7   : > { %270 = vadd.xlane.f32.xlu2 %v269_v22 }
 0x2f8   : > { %v729_v23 = vpop.xlane.xlu1 %728 }
 0x2f9   : > { %1167 = vrcp.f32 %v729_v23 }
 0x2ff   : > { %v1168_v24 = vpop.eup %1167 }
 0x300   : > { %v735_v26 = vperm.slane %v1168_v24, 3  ;;  %v733_v27 = vperm.slane %v1168_v24, 1  ;;  %v732_v30 = vperm.slane %v1168_v24, 0  ;;  %v738_v32 = vperm.slane %v1168_v24, 6 }
 0x301   : > { %v736_v33 = vperm.slane %v1168_v24, 4  ;;  %v734_v25 = vperm.slane %v1168_v24, 2  ;;  %v737_v55 = vperm.slane %v1168_v24, 5  ;;  %v739_v62 = vperm.slane %v1168_v24, 7 }
 0x302   : > { %v751_v31 = vmul.f32 %v1160_v34, %v735_v26  ;;  %v749_v28 = vmul.f32 %v1551_v44, %v733_v27  ;;  %v748_v29 = vmul.f32 %v1543_v36, %v732_v30  ;;  %v754_v40 = vmul.f32 %v1158_v49, %v738_v32 }
 0x303   : > { %v752_v47 = vmul.f32 %v1549_v43, %v736_v33  ;;  %v750_v48 = vmul.f32 %v1541_v35, %v734_v25  ;;  %v279_v36 = vsel %vm278_vm12, %v1439_v3, 0  ;;  %v753_v35 = vmul.f32 %v1557_v52, %v737_v55 }
 0x304   : > { %v759_v41 = vpack.c.bf16 %v751_v31, %v751_v31  ;;  %v757_v46 = vpack.c.bf16 %v749_v28, %v749_v28  ;;  %v756_v38 = vpack.c.bf16 %v748_v29, %v748_v29  ;;  %v762_v54 = vpack.c.bf16 %v754_v40, %v754_v40  ;;  %288 = vmatpush.bf16.msra.mxu2 %v279_v36 }
 0x305   : > { %v760_v58 = vpack.c.bf16 %v752_v47, %v752_v47  ;;  %v758_v44 = vpack.c.bf16 %v750_v48, %v750_v48  ;;  %v761_v61 = vpack.c.bf16 %v753_v35, %v753_v35  ;;  %v755_v3 = vmul.f32 %v1560_v53, %v739_v62 }
 0x306   : > { %v775_v50 = vunpack.c.l.b16 %v759_v41  ;;  %v773_v51 = vunpack.c.l.b16 %v757_v46  ;;  %v772_v39 = vunpack.c.l.b16 %v756_v38  ;;  %v778_v43 = vunpack.c.l.b16 %v762_v54 }
 0x307   : > { %v776_v49 = vunpack.c.l.b16 %v760_v58  ;;  %v774_v42 = vunpack.c.l.b16 %v758_v44  ;;  %v777_v0 = vunpack.c.l.b16 %v761_v61  ;;  %v763_v52 = vpack.c.bf16 %v755_v3, %v755_v3 }
 0x308   : > { %v1026_v56 = vunpack.i.l.s16 %v775_v50  ;;  %v1024_v57 = vunpack.i.l.s16 %v773_v51  ;;  %v1023_v34 = vunpack.i.l.s16 %v772_v39  ;;  %846 = vmatpush.bf16.msrb.mxu2 %v279_v36  ;;  %v1029_v59 = vunpack.i.l.s16 %v778_v43 }
 0x309   : > { %v1027_v60 = vunpack.i.l.s16 %v776_v49  ;;  %v1025_v37 = vunpack.i.l.s16 %v774_v42  ;;  %v1028_v4 = vunpack.i.l.s16 %v777_v0  ;;  %v779_v8 = vunpack.c.l.b16 %v763_v52 }
 0x30a   : > { %806 = vperm.xlu1 %1131, %v1026_v56   ;;  %800 = vperm.xlu0 %1132, %v1024_v57   ;;  %v323_v53 = vmul.f32 1.442695, %v322_v45  ;;  %v855_v43 = vperm.slane %v1443_v6, 2  ;;  %v858_v49 = vperm.slane %v1443_v6, 3 }
 0x30b   : > { %797 = vperm.xlu2 %1130, %v1023_v34   ;;  %v1030_v9 = vunpack.i.l.s16 %v779_v8 }
 0x312   : > { %815 = vperm.xlu1 %1131, %v1029_v59   ;;  %809 = vperm.xlu0 %1132, %v1027_v60  }
 0x313   : > { %803 = vperm.xlu2 %1130, %v1025_v37  }
 0x31a   : > { %334 = vrot.lane.b32.xlu1 %v333_v1, %s1316_s11  ;;  %812 = vperm.xlu0 %1132, %v1028_v4   ;;  %v271_v7 = vpop.xlane.xlu2 %270 }
 0x31b   : > { %1169 = vrcp.f32 %v271_v7 }
 0x31c   : > { %1171 = vpow2.f32 %v323_v53 }
 0x321   : > { %v1170_v10 = vpop.eup %1169 }
 0x322   : > { %818 = vperm.xlu0 %1132, %v1030_v9   ;;  %v273_v13 = vmul.f32 %v1170_v10, %v1581_v21  ;;  %v1172_v15 = vpop.eup %1171 }
 0x323   : > { %v325_v16 = vsel %vm262_vm11, %v1172_v15, 0.0 }
 0x324   : > { %v274_v14 = vpack.c.bf16 %v273_v13, %v273_v13 }
 0x326   : > { %1016 = vmatmul.msk.bf16.vlgmr.msra.gmra.mxu2 %vm262_vm11, %v274_v14 }
 0x33c   : > { %326 = vadd.xlane.f32.xlu2 %v325_v16 }
 0x365   : > { %v798_v19 = vpop.permute.xlu2 %797 }
 0x366   : > { %v820_v21 = vperm.slane %v798_v19, %v1441_v5 }
 0x36d   : > { %v804_v24 = vpop.permute.xlu2 %803 }
 0x36e   : > { %v822_v12 = vperm.slane %v804_v24, %v1441_v5  ;;  %v892_v24 = vperm.slane %v1443_v6, 5 }
 0x37c   : > { %v807_v17 = vpop.permute.xlu1 %806  ;;  %v801_v18 = vpop.permute.xlu0 %800 }
 0x37d   : > { %v821_v23 = vperm.slane %v801_v18, %v1441_v5  ;;  %v823_v31 = vperm.slane %v807_v17, %v1441_v5 }
 0x37f   : > { %v828_v26 = vsel %vm361_vm2, %v821_v23, %v820_v21 }
 0x380   : > { %v829_v33 = vsel %vm365_vm3, %v822_v12, %v828_v26 }
 0x381   : > { %v830_v29 = vsel %vm369_vm6, %v823_v31, %v829_v33 }
 0x384   : > { %v816_v20 = vpop.permute.xlu1 %815  ;;  %v810_v22 = vpop.permute.xlu0 %809 }
 0x385   : > { %v824_v25 = vperm.slane %v810_v22, %v1441_v5  ;;  %v826_v46 = vperm.slane %v816_v20, %v1441_v5  ;;  %v890_v22 = vperm.slane %v1443_v6, 4 }
 0x387   : > { %v831_v40 = vsel %vm626_vm7, %v824_v25, %v830_v29 }
 0x38c   : > { %v335_v27 = vpop.permute.xlu1 %334  ;;  %v813_v30 = vpop.permute.xlu0 %812 }
 0x38d   : > { %v340_v32 = vsel %vm278_vm12, %v335_v27, 0  ;;  %v825_v28 = vperm.slane %v813_v30, %v1441_v5 }
 0x38e   : > { %349 = vmatpush.bf16.msrb.mxu0 %v340_v32 }
 0x38f   : > { %v832_v41 = vsel %vm628_vm8, %v825_v28, %v831_v40 }
 0x390   : > { %v833_v48 = vsel %vm630_vm9, %v826_v46, %v832_v41 }
 0x394   : > { %v819_v38 = vpop.permute.xlu0 %818 }
 0x395   : > { %v827_v47 = vperm.slane %v819_v38, %v1441_v5  ;;  %v852_v5 = vperm.slane %v1443_v6, 1 }
 0x397   : > { %v834_v50 = vsel %vm632_vm10, %v827_v47, %v833_v48 }
 0x398   : > { %v835_v51 = vpack.c.b16 %v834_v50, %v834_v50 }
 0x39a   : > { %1031 = vmatmul.msk.bf16.vlgmr.msrb.gmra.mxu2 %vm262_vm11, %v835_v51 }
 0x3a9   : > { %v290_v39 = vpop.f32.mrf.mxu2 }
 0x3aa   : > { %v853_v36 = vmul.f32 %v852_v5, %v290_v39 }
 0x3ac   : > { %v854_v42 = vadd.f32 %v853_v36, %v1432_v2 }
 0x3af   : > { %v327_v54 = vpop.xlane.xlu2 %326 }
 0x3b0   : > { %1173 = vrcp.f32 %v327_v54 }
 0x3b1   : > { %v292_v55 = vpop.f32.mrf.mxu2  ;;  %1175 = vrcp.f32 %v1317_v11 }
 0x3b6   : > { %v1174_v56 = vpop.eup %1173 }
 0x3b7   : > { %v329_v57 = vmul.f32 %v1174_v56, %v1172_v15  ;;  %v1176_v0 = vpop.eup %1175 }
 0x3b8   : > { %v865_v3 = vmul.f32 16.0, %v1176_v0  ;;  %vm869_vm13 = vweird.f32 %v1176_v0 }
 0x3b9   : > { %v330_v34 = vpack.c.bf16 %v329_v57, %v329_v57 }
 0x3ba   : > { %v866_v1 = vsub.f32 1.0, %v865_v3 }
 0x3bb   : > { %1018 = vmatmul.msk.bf16.vlgmr.msrb.gmra.mxu0 %vm262_vm11, %v330_v34 }
 0x3bc   : > { %v867_v4 = vmul.f32 %v1176_v0, %v866_v1 }
 0x3be   : > { %v868_v52 = vadd.f32 %v1176_v0, %v867_v4 }
 0x3c0   : > { %v870_v7 = vsel %vm869_vm13, %v1176_v0, %v868_v52 }
 0x41d   : > { %v848_v58 = vpop.f32.mrf.mxu2 }
 0x41e   : > { %v859_v60 = vmul.f32 %v858_v49, %v848_v58 }
 0x425   : > { %v850_v44 = vpop.f32.mrf.mxu2 }
 0x438   : > { %v351_v35 = vpop.f32.mrf.mxu0 }
 0x439   : > { %v856_v59 = vmul.f32 %v855_v43, %v351_v35 }
 0x43b   : > { %v857_v61 = vadd.f32 %v856_v59, %v854_v42 }
 0x43d   : > { %v860_v62 = vadd.f32 %v859_v60, %v857_v61 }
 0x43f   : > { %v861_v37 = vsel %vm225_vm5, %v860_v62, 0.0 }
 0x440   : > { %v353_v63 = vpop.f32.mrf.mxu0  ;;  %862 = vadd.xlane.f32.xlu0 %v861_v37 }
 0x4b3   : > { %v863_v8 = vpop.xlane.xlu0 %862 }
 0x4b4   : > { %v871_v2 = vmul.f32 %v870_v7, %v863_v8 }
 0x4b6   : > { %v872_v9 = vsub.f32 %v860_v62, %v871_v2 }
 0x4b8   : > { %v873_v10 = vmul.f32 %v872_v9, %v872_v9 }
 0x4ba   : > { %v874_v13 = vsel %vm225_vm5, %v873_v10, 0.0 }
 0x4bb   : > { %875 = vadd.xlane.f32.xlu1 %v874_v13 }
 0x52e   : > { %v876_v14 = vpop.xlane.xlu1 %875 }
 0x52f   : > { %v877_v45 = vmul.f32 %v876_v14, %v870_v7 }
 0x531   : > { %v878_v53 = vadd.f32 1e-05, %v877_v45 }
 0x533   : > { %1177 = vrsqrt.f32 %v878_v53  ;;  %vm885_vm15 = vweird.f32 %v878_v53 }
 0x539   : > { %v1178_v15 = vpop.eup %1177 }
 0x53a   : > { %v880_v16 = vmul.f32 %v1178_v15, %v878_v53  ;;  %vm886_vm14 = vweird.f32 %v1178_v15 }
 0x53b   : > { %vm887_vm0 = vmor %vm885_vm15, %vm886_vm14 }
 0x53c   : > { %v881_v17 = vmul.f32 %v1178_v15, %v880_v16 }
 0x53e   : > { %v882_v18 = vmul.f32 0.5, %v881_v17 }
 0x540   : > { %v883_v19 = vsub.f32 1.5, %v882_v18 }
 0x542   : > { %v884_v20 = vmul.f32 %v1178_v15, %v883_v19 }
 0x544   : > { %v888_v23 = vsel %vm887_vm0, %v1178_v15, %v884_v20 }
 0x545   : > { %v889_v21 = vmul.f32 %v888_v23, %v872_v9 }
 0x547   : > { %v891_v26 = vmul.f32 %v890_v22, %v889_v21 }
 0x549   : > { %v893_v12 = vadd.f32 %v892_v24, %v891_v26 }
 0x54b   : > { %894 = vst.msk [vmem:[%s1426_s30] sm:$0xff] %vm225_vm5, %v893_v12 }
 0x54c   : > { %1236 = shalt.err (!%p1233_p11)
}
 0x54d   : > { %1042 = dma.vmem_to_hbm [thread:$0]  (%p1388_p3), %s909_s29, 128, %s911_s27, %s896_s16  }
 0x54e PF: > { %p1054_p12 = scmp.ge.s32.totalorder %s1307_s19, 2  ;;  %s922_s10 = sand.u32 1, %s1279_s12  }
 0x54f   : > { %s923_s30 = scalar_lea.sflag [#allocation4], %s922_s10 }
 0x550   : > { %p1049_p13 = pnand %p1054_p12, %p1398_p9 }
 0x552   : > { %p1050_p0 = pneg %p1049_p13 }
 0x554   : > { %1274 = dma.done.wait (%p1050_p0), %s923_s30, 128  }
 0x555   : > { %1276 = vsyncadd (%p1050_p0), %s923_s30, 4294967168  ;;  %s17_s19 = sadd.s32 1, %s1307_s19   ;;  %s1678_s12 = smov %s1283_s13 }
 0x556   : > { %p14_p1 = scmp.ge.s32.totalorder %s17_s19, 6   ;;  %s1679_s13 = smov %s1287_s14 }
 0x557   : > { %s1680_s14 = smov %s1414_s5  ;;  %s1681_s15 = smov %s1299_s17 }
 0x558   : > { %s1682_s16 = smov %s1303_s18  ;;  %s1683_s17 = smov %s1686_s22 }
 0x559   : > { %s1684_s18 = smov %s1690_s23  ;;  %16 = sbr.rel (!%p14_p1) target bundleno = 6 (0x6), region = 78 }
 0x55e   :  { %929 = vsyncpa [#allocation3], 1 }
 0x55f   :  { %931 = vsyncpa [#allocation3 + $0x1], 1 }
 0x560   :  { %932 = vsyncpa [#allocation4], 1 }
 0x561   :  { %934 = vsyncpa [#allocation4 + $0x1], 1 }

</bundles_post_ra>
